<compile_context>
chip_gen: v7x
topology: tpu7x:2x2x1
jax: 0.10.0
libtpu: 0.0.40
codegen_flags: <defaults>
</compile_context>

<pallas_src>
import jax
import jax.numpy as jnp
from jax.experimental import pallas as pl
from jax.experimental.pallas import tpu as pltpu


def _abs_kernel(x_ref, o_ref):
    o_ref[...] = jnp.abs(x_ref[...])


# Minimum sublane count per packed vreg, keyed by dtype byte-width.
_SUBLANE_PACK = {4: 8, 2: 16, 1: 32}


def _vmem_budget():
    """Return (target_block_bytes, vmem_limit_bytes), per TPU generation.

    Double-buffered in+out uses 4x the block size; keep that comfortably
    under the physical VMEM of the current chip (v5e/v6e: 128 MiB,
    v7x: 64 MiB per TensorCore) and set the scoped limit explicitly so we
    never silently rely on a per-generation default.
    """
    cap = None
    try:
        cap = int(getattr(pltpu.get_tpu_info(), "vmem_capacity_bytes", 0))
    except Exception:
        cap = None
    if not cap or cap <= 0:
        cap = 64 * 1024 * 1024  # conservative: assume v7x-sized VMEM

    mib = 1024 * 1024
    block = min(8 * mib, max(512 * 1024, cap // 8))      # 8 MiB on v6e/v7x/v5e
    limit = min(cap - 8 * mib, 4 * block + 8 * mib)       # 40 MiB for 8 MiB blocks
    limit = max(limit, 4 * block)
    return block, limit


def pallas_abs(x):
    """Elementwise |x| via a Pallas TPU kernel (mem-bound, VPU only)."""
    if x.size == 0:
        return x
    if jnp.issubdtype(x.dtype, jnp.complexfloating):
        # torch.abs(complex) returns a real magnitude (dtype changes); handle
        # outside the streaming kernel rather than declaring a wrong out_shape.
        return jnp.abs(x)

    orig_shape = x.shape
    n = x.size
    dsize = x.dtype.itemsize
    pack = _SUBLANE_PACK.get(dsize, 8)

    # Lane-dense last dim: largest multiple of 128 that divides n exactly so
    # the slab reshape is free and every store is an unmasked full-lane vst.
    lanes = 0
    for cand in (8192, 4096, 2048, 1024, 512, 256, 128):
        if n % cand == 0:
            lanes = cand
            break
    if lanes == 0:
        # Ragged size: pad + un-pad would roughly double HBM traffic for a
        # purely bandwidth-bound op, so let XLA handle it directly.
        # TODO(synk): handle the ragged tail in-kernel with a masked last block.
        return jnp.abs(x)

    rows = n // lanes
    x2d = x.reshape(rows, lanes)

    target_block_bytes, vmem_limit = _vmem_budget()

    # Largest pack-aligned row tile that fits the per-block VMEM target.
    max_tile_rows = max(pack, (target_block_bytes // (lanes * dsize)) // pack * pack)

    if rows <= pack:
        tile_rows = rows  # full-extent block along rows is always legal
    else:
        # Even, pack-aligned split with >=2 grid steps so both of v7x's
        # TensorCores get work; avoids a (huge, tiny-remainder) split.
        steps = max(2, pl.cdiv(rows, max_tile_rows))
        tile_rows = pl.cdiv(pl.cdiv(rows, steps), pack) * pack

    grid = (pl.cdiv(rows, tile_rows),)

    out = pl.pallas_call(
        _abs_kernel,
        out_shape=jax.ShapeDtypeStruct((rows, lanes), x.dtype),
        grid=grid,
        in_specs=[pl.BlockSpec((tile_rows, lanes), lambda i: (i, 0))],
        out_specs=pl.BlockSpec((tile_rows, lanes), lambda i: (i, 0)),
        compiler_params=pltpu.CompilerParams(
            dimension_semantics=("parallel",),
            vmem_limit_bytes=vmem_limit,
        ),
        cost_estimate=pl.CostEstimate(
            flops=n, transcendentals=0, bytes_accessed=2 * n * dsize
        ),
    )(x2d)

    return out.reshape(orig_shape)


if __name__ == "__main__":
    key = jax.random.PRNGKey(0)
    # Small NCHW-like input consistent with a typical toy forward pass.
    x = jax.random.normal(key, (2, 4, 16, 16), dtype=jnp.float32)

    y = pallas_abs(x)
    jax.block_until_ready(y)

    # Verify against the reference semantics of torch.abs.
    y_ref = jnp.abs(x)
    assert y.shape == x.shape and y.dtype == x.dtype
    assert jnp.allclose(y, y_ref), "mismatch vs jnp.abs reference"

    # Also exercise a larger, multi-grid-step path and a ragged fallback.
    x_big = jax.random.normal(jax.random.PRNGKey(1), (64, 1024), dtype=jnp.float32)
    assert jnp.allclose(pallas_abs(x_big), jnp.abs(x_big))
    x_ragged = jax.random.normal(jax.random.PRNGKey(2), (7, 13), dtype=jnp.float32)
    assert jnp.allclose(pallas_abs(x_ragged), jnp.abs(x_ragged))

    print("KERNEL_OK")
</pallas_src>

<mosaic_0001>
module attributes {stable_mosaic.version = 11 : i64} {
  func.func @_abs_kernel(%arg0: i32, %arg1: memref<1x2048xf32, #tpu.memory_space<vmem>>, %arg2: memref<1x2048xf32, #tpu.memory_space<vmem>>) attributes {dimension_semantics = [#tpu.dimension_semantics<parallel>], iteration_bounds = array<i64: 1>, scalar_prefetch = 0 : i64, scratch_operands = 0 : i64, tpu.core_type = #tpu.core_type<tc>, window_params = [{transform_indices = @transform_0, window_bounds = array<i64: 1, 2048>}, {transform_indices = @transform_1, window_bounds = array<i64: 1, 2048>}]} {
    %c0 = arith.constant 0 : index
    %c0_0 = arith.constant 0 : index
    %0 = vector.load %arg1[%c0, %c0_0] : memref<1x2048xf32, #tpu.memory_space<vmem>>, vector<1x2048xf32>
    %1 = math.absf %0 : vector<1x2048xf32>
    %c0_1 = arith.constant 0 : index
    %c0_2 = arith.constant 0 : index
    %2 = vector.load %arg2[%c0_1, %c0_2] : memref<1x2048xf32, #tpu.memory_space<vmem>>, vector<1x2048xf32>
    tpu.vector_store %arg2[%c0_1, %c0_2], %1 {strides = array<i32>} : memref<1x2048xf32, #tpu.memory_space<vmem>>, vector<1x2048xf32>,
    return
  }
  func.func @transform_0(%arg0: i32) -> (i32, i32) {
    %c0_i32 = arith.constant 0 : i32
    %c0_i32_0 = arith.constant 0 : i32
    return %arg0, %c0_i32 : i32, i32
  }
  func.func @transform_1(%arg0: i32) -> (i32, i32) {
    %c0_i32 = arith.constant 0 : i32
    %c0_i32_0 = arith.constant 0 : i32
    return %arg0, %c0_i32 : i32, i32
  }
}

</mosaic_0001>

<bundles_post_ra>
// kernel: tpu_custom_call.1
= control target key start
LH: loop header
LB: loop body
LE: loop exit
PB: predicated region body
PF: predicated region fallthrough
CT: control target
= control target key end

     0   :  { %6 = vsyncpa [#allocation3], 0  ;;  %s128_s0 = inlined_call_operand.hbm [shape: f32[1,2048], index: 0, kind: input, shape index: {}]   ;;  %s129_s1 = inlined_call_operand.hbm [shape: f32[1,2048], index: 1, kind: output, shape index: {}]  }
   0x1   :  { %7 = vsyncpa [#allocation4], 0  ;;  %s92_s6 = smov [#allocation2]   ;;  %s44_s10 = scalar_lea.hbm %s128_s0, 256 }
   0x2   :  { %s14_s7 = sshll.u32 %s92_s6, 4  ;;  %p45_p0 = scmp.ne.s32.totalorder %s128_s0, %s44_s10  ;;  %s15_s7 = int_to_ptr.vmem [resolvable:$true] %s14_s7 }
   0x3   :  { %p48_p1 = scmp.lt.u32.totalorder %s44_s10, %s128_s0 }
   0x5   :  { %p50_p2 = pnand %p48_p1, %p45_p0 }
   0x7   :  { %53 = shalt.err (!%p50_p2)
}
   0x8   :  { %s54_s15 = scalar_lea.vmem %s15_s7, 256  ;;  %p59_p4 = scmp.lt.s32.totalorder %s15_s7, %s15_s7 }
   0x9   :  { %p55_p3 = scmp.ne.s32.totalorder %s15_s7, %s54_s15  ;;  %p60_p5 = scmp.lt.s32.totalorder %s54_s15, %s54_s15 }
   0xb   :  { %p61_p6 = por %p60_p5, %p59_p4 }
   0xd   :  { %p62_p7 = pnand %p61_p6, %p55_p3 }
   0xf   :  { %65 = shalt.err (!%p62_p7)
}
  0x10   :  { %17 = dma.hbm_to_vmem [thread:$0]  %s128_s0, 256, %s15_s7, [#allocation3]  }
  0x11   :  { %88 = dma.done.wait [#allocation3], 256  }
  0x12   :  { %89 = vsyncadd [#allocation3], 4294967040  ;;  %s93_s18 = smov [#allocation5]   ;;  %v21_v0 = vld [vmem:[#allocation2] sm:$0xff]  ;;  %v22_v1 = vld [vmem:[#allocation2 + $0x8] sm:$0xff] }
  0x13   :  { %s33_s19 = sshll.u32 %s93_s18, 4  ;;  %v23_v2 = vand.u32 2147483647, %v21_v0  ;;  %v24_v3 = vand.u32 2147483647, %v22_v1  ;;  %s34_s19 = int_to_ptr.vmem [resolvable:$true] %s33_s19 }
  0x14   :  { %s66_s20 = scalar_lea.vmem %s34_s19, 256  ;;  %p71_p9 = scmp.lt.s32.totalorder %s34_s19, %s34_s19 }
  0x15   :  { %25 = vst [vmem:[#allocation5] sm:$0xff] %v23_v2  ;;  %26 = vst [vmem:[#allocation5 + $0x8] sm:$0xff] %v24_v3  ;;  %p67_p8 = scmp.ne.s32.totalorder %s34_s19, %s66_s20  ;;  %p72_p10 = scmp.lt.s32.totalorder %s66_s20, %s66_s20 }
  0x17   :  { %p73_p11 = por %p72_p10, %p71_p9 }
  0x19   :  { %p74_p12 = pnand %p73_p11, %p67_p8 }
  0x1b   :  { %77 = shalt.err (!%p74_p12)
}
  0x1c   :  { %s78_s22 = scalar_lea.hbm %s129_s1, 256 }
  0x1d   :  { %p79_p13 = scmp.ne.s32.totalorder %s129_s1, %s78_s22  ;;  %p82_p0 = scmp.lt.u32.totalorder %s78_s22, %s129_s1 }
  0x1f   :  { %p84_p1 = pnand %p82_p0, %p79_p13 }
  0x21   :  { %87 = shalt.err (!%p84_p1)
}
  0x22   :  { %36 = dma.vmem_to_hbm [thread:$0]  %s34_s19, 256, %s129_s1, [#allocation4]  }
  0x23   :  { %90 = dma.done.wait [#allocation4], 256  }
  0x24   :  { %91 = vsyncadd [#allocation4], 4294967040 }
  0x25   :  { %40 = vsyncpa [#allocation3], 1 }
  0x26   :  { %41 = vsyncpa [#allocation4], 1 }

</bundles_post_ra>
